<compile_context>
chip_gen: v6e
topology: v6e:2x2x1
jax: 0.10.0
libtpu: 0.0.40
codegen_flags: <defaults>
</compile_context>

<pallas_src>
import jax
import jax.numpy as jnp
from jax import lax
from jax.experimental import pallas as pl
from jax.experimental.pallas import tpu as pltpu


def _pick_tile(hw: int) -> int:
    for tp in (4096, 2048, 1024, 512, 256, 128):
        if hw % tp == 0:
            return tp
    # TODO(synk): ragged H*W (not a multiple of 128, e.g. 14x14 maps) needs a
    # masked tail tile; not required for the shapes exercised here.
    raise ValueError(f"H*W={hw} must be a multiple of 128")


def _encoder_codes_kernel(x_ref, m_ref, corr_ref, out_ref):
    # x_ref:    (1, C, TP)  pixels of one batch element, channels on sublanes
    # m_ref:    (K, C)      fused -2 * codebook @ W_enc^T
    # corr_ref: (1, K, 1)   per-batch correction: ||e_k||^2 - 2*(b + mod_emb).e_k
    # out_ref:  (1, 1, TP)  int32 code index per pixel (lane-dense)
    #
    # dist_kp (up to a per-pixel constant) = M @ x + corr
    dist = jnp.dot(m_ref[...], x_ref[0],
                   preferred_element_type=jnp.float32) + corr_ref[0]   # (K, TP)

    k = dist.shape[0]
    min_d = jnp.min(dist, axis=0, keepdims=True)                       # (1, TP)
    k_iota = lax.broadcasted_iota(jnp.int32, dist.shape, 0)            # (K, TP)
    # first index achieving the minimum (matches jnp.argmin tie-break)
    codes = jnp.min(jnp.where(dist == min_d, k_iota, k),
                    axis=0, keepdims=True)                             # (1, TP)
    out_ref[0] = codes


def encoder_forward(x_nchw, mod, params, num_embeddings):
    """Pallas equivalent of _Encoder.forward(input, mod)."""
    B, C, H, W = x_nchw.shape
    HW = H * W
    K = num_embeddings
    TP = _pick_tile(HW)

    # glue (no transpose): NCHW -> (B, C, H*W); pixels end up on the lane axis.
    x_flat = x_nchw.reshape(B, C, HW)

    cb = params["codebook"]                                    # (K, D)
    # fuse the linear encoder through the codebook: the kernel only ever sees
    # a (K, C) matrix and a (K, 1) per-batch correction.
    m = (-2.0) * (cb @ params["wenc"].T)                       # (K, C)
    e_sq = jnp.sum(cb * cb, axis=-1)                           # (K,)
    c = params["benc"][None, :] + params["mod_emb"][mod]       # (B, D)
    corr = (e_sq[None, :] - 2.0 * (c @ cb.T)).reshape(B, K, 1)

    codes = pl.pallas_call(
        _encoder_codes_kernel,
        out_shape=jax.ShapeDtypeStruct((B, 1, HW), jnp.int32),
        grid_spec=pltpu.PrefetchScalarGridSpec(
            num_scalar_prefetch=0,
            grid=(B, HW // TP),
            in_specs=[
                pl.BlockSpec((1, C, TP), lambda b, p: (b, 0, p)),
                pl.BlockSpec((K, C), lambda b, p: (0, 0)),
                pl.BlockSpec((1, K, 1), lambda b, p: (b, 0, 0)),
            ],
            out_specs=pl.BlockSpec((1, 1, TP), lambda b, p: (b, 0, p)),
        ),
        compiler_params=pltpu.CompilerParams(
            dimension_semantics=("parallel", "parallel")),
    )(x_flat, m, corr)                                         # (B, 1, HW)

    codes = codes.reshape(B, HW)
    # glue: one_hot + flatten in XLA, identical ordering to
    # torch.reshape(F.one_hot(codes, K), (B, -1)).
    onehot = jax.nn.one_hot(codes, K, dtype=jnp.int32)         # (B, HW, K)
    return onehot.reshape(B, HW * K)


def _reference(x_nchw, mod, params, K):
    """Pure-JAX reference using the canonical (unfolded) VQ distance."""
    B, C, H, W = x_nchw.shape
    x_flat = jnp.transpose(x_nchw, (0, 2, 3, 1)).reshape(B, H * W, C)
    z = x_flat @ params["wenc"] + params["benc"][None, None, :]
    z = z + params["mod_emb"][mod][:, None, :]
    e = params["codebook"]
    dist = (jnp.sum(z * z, -1, keepdims=True)
            - 2.0 * jnp.einsum("bpd,kd->bpk", z, e)
            + jnp.sum(e * e, -1)[None, None, :])
    codes = jnp.argmin(dist, axis=-1)                          # (B, HW)
    return codes, dist


if __name__ == "__main__":
    B, C, H, W = 2, 4, 16, 16
    D, K, NUM_MODS = 32, 8, 3

    key = jax.random.PRNGKey(0)
    k1, k2, k3, k4, k5, k6 = jax.random.split(key, 6)
    params = {
        "wenc": jax.random.normal(k1, (C, D), jnp.float32) * 0.1,
        "benc": jax.random.normal(k2, (D,), jnp.float32) * 0.01,
        "codebook": jax.random.normal(k3, (K, D), jnp.float32),
        "mod_emb": jax.random.normal(k4, (NUM_MODS, D), jnp.float32) * 0.1,
    }
    x = jax.random.normal(k5, (B, C, H, W), jnp.float32)
    mod = jax.random.randint(k6, (B,), 0, NUM_MODS)

    out = encoder_forward(x, mod, params, K)
    out = jax.block_until_ready(out)
    assert out.shape == (B, H * W * K), out.shape

    ref_codes, ref_dist = _reference(x, mod, params, K)
    ref_out = jax.nn.one_hot(ref_codes, K, dtype=jnp.int32).reshape(B, -1)
    if not bool(jnp.all(out == ref_out)):
        # Any disagreement must be a genuine numerical tie: the code the kernel
        # picked must achieve (within tolerance) the same minimum distance.
        kern_codes = jnp.argmax(out.reshape(B, H * W, K), axis=-1)
        d_k = jnp.take_along_axis(ref_dist, kern_codes[..., None], axis=-1)[..., 0]
        d_r = jnp.take_along_axis(ref_dist, ref_codes[..., None], axis=-1)[..., 0]
        assert float(jnp.max(jnp.abs(d_k - d_r))) < 1e-3, \
            "mismatch vs. pure-JAX reference"
    print("KERNEL_OK")
</pallas_src>

<mosaic_0001>
module attributes {stable_mosaic.version = 11 : i64} {
  func.func @_encoder_codes_kernel(%arg0: i32, %arg1: i32, %arg2: memref<1x4x256xf32, #tpu.memory_space<vmem>>, %arg3: memref<8x4xf32, #tpu.memory_space<vmem>>, %arg4: memref<1x8x1xf32, #tpu.memory_space<vmem>>, %arg5: memref<1x1x256xi32, #tpu.memory_space<vmem>>) attributes {dimension_semantics = [#tpu.dimension_semantics<parallel>, #tpu.dimension_semantics<parallel>], iteration_bounds = array<i64: 2, 1>, scalar_prefetch = 0 : i64, scratch_operands = 0 : i64, tpu.core_type = #tpu.core_type<tc>, window_params = [{transform_indices = @transform_0, window_bounds = array<i64: 1, 4, 256>}, {pipeline_mode = #tpu.pipeline_mode<synchronous>, transform_indices = @transform_1, window_bounds = array<i64: 8, 4>}, {transform_indices = @transform_2, window_bounds = array<i64: 1, 8, 1>}, {transform_indices = @transform_3, window_bounds = array<i64: 1, 1, 256>}]} {
    %c0 = arith.constant 0 : index
    %c0_0 = arith.constant 0 : index
    %0 = vector.load %arg3[%c0, %c0_0] : memref<8x4xf32, #tpu.memory_space<vmem>>, vector<8x4xf32>
    %c0_1 = arith.constant 0 : index
    %c0_2 = arith.constant 0 : index
    %c0_3 = arith.constant 0 : index
    %1 = vector.load %arg2[%c0_1, %c0_2, %c0_3] : memref<1x4x256xf32, #tpu.memory_space<vmem>>, vector<1x4x256xf32>
    %2 = vector.shape_cast %1 : vector<1x4x256xf32> to vector<4x256xf32>
    %cst = arith.constant dense<0.000000e+00> : vector<8x256xf32>
    %3 = tpu.matmul %0, %2, %cst {dimension_numbers = #tpu.dot_dimension_numbers<[1], [0], [0], [1], [0, 0, 1, 1], [], []>} : vector<8x4xf32>, vector<4x256xf32>, vector<8x256xf32> -> vector<8x256xf32>
    %c0_4 = arith.constant 0 : index
    %c0_5 = arith.constant 0 : index
    %c0_6 = arith.constant 0 : index
    %4 = vector.load %arg4[%c0_4, %c0_5, %c0_6] : memref<1x8x1xf32, #tpu.memory_space<vmem>>, vector<1x8x1xf32>
    %5 = vector.shape_cast %4 : vector<1x8x1xf32> to vector<8x1xf32>
    %6 = vector.broadcast %5 : vector<8x1xf32> to vector<8x256xf32>
    %7 = arith.addf %3, %6 : vector<8x256xf32>
    %cst_7 = arith.constant dense<0x7F800000> : vector<256xf32>
    %8 = vector.multi_reduction <minimumf>, %7, %cst_7 [0] : vector<8x256xf32> to vector<256xf32>
    %9 = vector.shape_cast %8 : vector<256xf32> to vector<1x256xf32>
    %10 = tpu.iota {dimensions = array<i32: 0>} : vector<8x256xi32>
    %11 = vector.broadcast %9 : vector<1x256xf32> to vector<8x256xf32>
    %12 = arith.cmpf oeq, %7, %11 : vector<8x256xf32>
    %c8_i32 = arith.constant 8 : i32
    %13 = vector.broadcast %c8_i32 : i32 to vector<8x256xi32>
    %14 = arith.select %12, %10, %13 : vector<8x256xi1>, vector<8x256xi32>
    %cst_8 = arith.constant dense<2147483647> : vector<256xi32>
    %15 = vector.multi_reduction <minsi>, %14, %cst_8 [0] : vector<8x256xi32> to vector<256xi32>
    %16 = vector.shape_cast %15 : vector<256xi32> to vector<1x256xi32>
    %c0_9 = arith.constant 0 : index
    %c0_10 = arith.constant 0 : index
    %c0_11 = arith.constant 0 : index
    %17 = vector.load %arg5[%c0_9, %c0_10, %c0_11] : memref<1x1x256xi32, #tpu.memory_space<vmem>>, vector<1x1x256xi32>
    %18 = vector.shape_cast %17 : vector<1x1x256xi32> to vector<1x256xi32>
    %19 = vector.shape_cast %16 : vector<1x256xi32> to vector<1x1x256xi32>
    tpu.vector_store %arg5[%c0_9, %c0_10, %c0_11], %19 {strides = array<i32>} : memref<1x1x256xi32, #tpu.memory_space<vmem>>, vector<1x1x256xi32>,
    return
  }
  func.func @transform_0(%arg0: i32, %arg1: i32) -> (i32, i32, i32) {
    %c0_i32 = arith.constant 0 : i32
    %c0_i32_0 = arith.constant 0 : i32
    return %arg0, %c0_i32, %arg1 : i32, i32, i32
  }
  func.func @transform_1(%arg0: i32, %arg1: i32) -> (i32, i32) {
    %c0_i32 = arith.constant 0 : i32
    %c0_i32_0 = arith.constant 0 : i32
    %c0_i32_1 = arith.constant 0 : i32
    return %c0_i32, %c0_i32_0 : i32, i32
  }
  func.func @transform_2(%arg0: i32, %arg1: i32) -> (i32, i32, i32) {
    %c0_i32 = arith.constant 0 : i32
    %c0_i32_0 = arith.constant 0 : i32
    %c0_i32_1 = arith.constant 0 : i32
    return %arg0, %c0_i32, %c0_i32_0 : i32, i32, i32
  }
  func.func @transform_3(%arg0: i32, %arg1: i32) -> (i32, i32, i32) {
    %c0_i32 = arith.constant 0 : i32
    %c0_i32_0 = arith.constant 0 : i32
    return %arg0, %c0_i32, %arg1 : i32, i32, i32
  }
}

</mosaic_0001>

<bundles_post_ra>
// kernel: tpu_custom_call.1
= control target key start
LH: loop header
LB: loop body
LE: loop exit
PB: predicated region body
PF: predicated region fallthrough
CT: control target
= control target key end

     0   :  { %8 = vsyncpa [#allocation3], 0  ;;  %s754_s0 = inlined_call_operand.vmem [shape: f32[2,4,256], index: 0, kind: input, shape index: {}]   ;;  %s755_s1 = inlined_call_operand.vmem [shape: f32[8,4], index: 1, kind: input, shape index: {}]   ;;  %s756_s2 = inlined_call_operand.vmem [shape: f32[2,8,1], index: 2, kind: input, shape index: {}]   ;;  %s757_s3 = inlined_call_operand.hbm [shape: s32[2,1,256], index: 3, kind: output, shape index: {}]  }
   0x1   :  { %10 = vsyncpa [#allocation3 + $0x1], 0  ;;  %s649_s12 = smov 0   ;;  %s651_s13 = smov 0  }
   0x2   :  { %s653_s14 = smov 0   ;;  %s655_s15 = smov 0  }
   0x3   :  { %s657_s16 = smov 0   ;;  %s659_s17 = smov 0  }
   0x4 LB: > { %s468_s18 = sadd.s32 4294967295, %s623_s17   ;;  %s469_s19 = sadd.s32 4294967294, %s623_s17   ;;  %s623_s17 = sphi %s659_s17, %s16_s17   ;;  %s619_s16 = sphi %s657_s16, %s764_s16   ;;  %s615_s15 = sphi %s655_s15, %s763_s15   ;;  %s611_s14 = sphi %s653_s14, %s762_s14   ;;  %s607_s13 = sphi %s651_s13, %s761_s13   ;;  %s603_s12 = sphi %s649_s12, %s760_s12  }
   0x5   : > { %s28_s20 = sadd.s32 1, %s619_s16  ;;  %s112_s21 = sadd.s32 1, %s611_s14 }
   0x6   : > { %p30_p0 = scmp.ge.s32.totalorder %s28_s20, 2  ;;  %p122_p1 = scmp.ne.s32.totalorder %s611_s14, %s607_s13 }
   0x7   : > { %p123_p2 = scmp.eq.s32.totalorder %s468_s18, 1  ;;  %p128_p3 = scmp.ne.s32.totalorder %s607_s13, %s603_s12 }
   0x8   : > { %s766_s20 = smov (%p30_p0, %s28_s20), 0  ;;  %p129_p5 = scmp.eq.s32.totalorder %s469_s19, 1 }
   0x9   : > { %p689_p4 = por %p123_p2, %p122_p1  ;;  %s107_s23 = ssub.s32 %s619_s16, %s766_s20 }
   0xa   : > { %p472_p6 = scmp.ge.s32.totalorder %s623_s17, 1  ;;  %p110_p7 = scmp.eq.s32.totalorder %s107_s23, 0 }
   0xb   : > { %p696_p8 = por %p129_p5, %p128_p3  ;;  %p170_p9 = scmp.lt.s32.totalorder %s623_s17, 3 }
   0xc   : > { %s702_s25 = scalar_select %p110_p7, %s611_s14, %s112_s21  }
   0xd   : > { %p171_p10 = pnand %p472_p6, %p170_p9 }
   0xe   : > { %p203_p11 = scmp.lt.s32.totalorder (!%p171_p10), %s615_s15, 1  ;;  %s199_s9 = sand.u32 (!%p171_p10), 1, %s607_s13  }
   0xf   : > { %174 = sbr.rel (%p171_p10) target bundleno = 271 (0x10f), region = 32  ;;  %s473_s10 = sshll.u32 (!%p171_p10), %s199_s9, 1 }
  0x10   : > { %s486_s11 = sshll.u32 (!%p171_p10), %s615_s15, 5  ;;  %s201_s18 = scalar_lea.vmem (!%p171_p10), [#allocation2], %s473_s10 }
  0x11   : > { %s380_s19 = sshll.u32 (!%p171_p10), %s201_s18, 4  ;;  %s628_s29 = smov (!%p171_p10), [#allocation2]   ;;  %s381_s19 = int_to_ptr.vmem [resolvable:$true] %s380_s19 }
  0x12   : > { %s547_s28 = scalar_lea.vmem (!%p171_p10), %s381_s19, 32 }
  0x13   : > { %p548_p12 = scmp.ne.s32.totalorder (!%p171_p10), %s381_s19, %s547_s28 }
  0x14   : > { %v625_v0 = vmov 0.0   ;;  %v626_v1 = vmov 0   ;;  %s204_s26 = scalar_select %p203_p11, %s615_s15, 1  ;;  %vm231_vm0 = vcmask 1043456   ;;  %v217_v5 = vld [vmem:[%s755_s1] sm:$0xff]  ;;  %vm227_vm1 = vcmask 31744  }
  0x15   : > { %300 = vmatprep.mubr.f32.mxu0 %v625_v0  ;;  %545 = vset.pattern.permute.xlu0 %v626_v1  ;;  %v319_v16 = vlaneseq  ;;  %v627_v31 = vmov 1966171168   ;;  %p549_p13 = pnand %p548_p12, %p689_p4 }
  0x16   : > { %s485_s27 = sshll.u32 %s204_s26, 3  ;;  %v345_v32 = vunpack.c.l.s4 %v627_v31  ;;  %s378_s26 = scalar_lea.hbm %s757_s3, %s486_s11 }
  0x17   : > { %s210_s30 = scalar_lea.vmem %s754_s0, %s485_s27  ;;  %s215_s6 = scalar_lea.vmem %s756_s2, %s485_s27  ;;  %v320_v21 = vshrl.u32 %v319_v16, 7  ;;  %vm360_vm10 = vcmp.lt.s32.totalorder %v319_v16, 256 }
  0x18   : > { %v218_v2 = vld [vmem:[%s210_s30] sm:$0xff]  ;;  %v346_v37 = vunpack.c.0.s8 %v345_v32  ;;  %s364_s27 = scalar_lea.sflag [#allocation3], %s199_s9  ;;  %p550_p0 = pneg %p549_p13 }
  0x19   : > { %v219_v3 = vld [vmem:[%s215_s6] sm:$0xff]  ;;  %v226_v4 = vcombine.high %v218_v2, %v218_v2  ;;  %s551_s30 = sshll.u32 %s628_s29, 4  ;;  %s552_s30 = int_to_ptr.vmem [resolvable:$false] %s551_s30 }
  0x1a   : > { %222 = vperm.xlu0 %545, %v219_v3   ;;  %v349_v40 = vsub.s32 %v346_v37, %v320_v21  ;;  %s553_s15 = scalar_lea.vmem %s552_s30, 64  ;;  %p554_p1 = scmp.lt.s32.totalorder %s381_s19, %s552_s30 }
  0x1b   : > { %477 = vmatprep.subr.msk.mxu0 %vm231_vm0, %v226_v4  ;;  %p555_p2 = scmp.lt.s32.totalorder %s553_s15, %s547_s28 }
  0x1c   : > { %478 = vmatpush1.msk.msra.mxu0 %vm231_vm0, %v218_v2 }
  0x1d   : > { %479 = vmatmul.mubr.msk.f32.vlgmr.msra.gmra.mxu0 %vm227_vm1, %v217_v5  ;;  %p556_p3 = por %p555_p2, %p554_p1 }
  0x1f   : > { %p557_p5 = pnand %p556_p3, %p550_p0 }
  0x95   : > { %v223_v6 = vpop.permute.xlu0 %222 }
  0xdd   : > { %v302_v7 = vpop.f32.mrf.mxu0 }
  0xde   : > { %v303_v8 = vadd.f32 %v302_v7, %v223_v6 }
  0xdf   : > { %v304_v9 = vpop.f32.mrf.mxu0 }
  0xe0   : > { %v307_v10 = vrot.slane %v303_v8, 4  ;;  %v305_v11 = vadd.f32 %v304_v9, %v223_v6 }
  0xe2   : > { %v308_v12 = vmin.f32 %v303_v8, %v307_v10  ;;  %v313_v13 = vrot.slane %v305_v11, 4 }
  0xe4   : > { %v309_v14 = vrot.slane %v308_v12, 2  ;;  %v314_v15 = vmin.f32 %v305_v11, %v313_v13 }
  0xe6   : > { %v310_v17 = vmin.f32 %v308_v12, %v309_v14  ;;  %v315_v18 = vrot.slane %v314_v15, 2 }
  0xe8   : > { %v311_v19 = vrot.slane %v310_v17, 1  ;;  %v316_v20 = vmin.f32 %v314_v15, %v315_v18 }
  0xea   : > { %v312_v22 = vmin.f32 %v310_v17, %v311_v19  ;;  %v317_v23 = vrot.slane %v316_v20, 1 }
  0xec   : > { %vm321_vm2 = vcmp.eq.f32.partialorder %v303_v8, %v312_v22  ;;  %v318_v24 = vmin.f32 %v316_v20, %v317_v23 }
  0xed   : > { %v323_v25 = vsel %vm321_vm2, %v320_v21, 8 }
  0xee   : > { %v325_v26 = vrot.slane %v323_v25, 4  ;;  %vm322_vm3 = vcmp.eq.f32.partialorder %v305_v11, %v318_v24 }
  0xef   : > { %v324_v27 = vsel %vm322_vm3, %v320_v21, 8 }
  0xf0   : > { %vm326_vm4 = vcmp.lt.s32.totalorder %v323_v25, %v325_v26  ;;  %v334_v28 = vrot.slane %v324_v27, 4 }
  0xf1   : > { %v327_v29 = vsel %vm326_vm4, %v323_v25, %v325_v26 }
  0xf2   : > { %v328_v30 = vrot.slane %v327_v29, 2  ;;  %vm335_vm5 = vcmp.lt.s32.totalorder %v324_v27, %v334_v28 }
  0xf3   : > { %v336_v33 = vsel %vm335_vm5, %v324_v27, %v334_v28 }
  0xf4   : > { %vm329_vm6 = vcmp.lt.s32.totalorder %v327_v29, %v328_v30  ;;  %v337_v34 = vrot.slane %v336_v33, 2 }
  0xf5   : > { %v330_v35 = vsel %vm329_vm6, %v327_v29, %v328_v30 }
  0xf6   : > { %v331_v36 = vrot.slane %v330_v35, 1  ;;  %vm338_vm7 = vcmp.lt.s32.totalorder %v336_v33, %v337_v34 }
  0xf7   : > { %v339_v38 = vsel %vm338_vm7, %v336_v33, %v337_v34 }
  0xf8   : > { %vm332_vm8 = vcmp.lt.s32.totalorder %v330_v35, %v331_v36  ;;  %v340_v39 = vrot.slane %v339_v38, 1 }
  0xf9   : > { %v333_v41 = vsel %vm332_vm8, %v330_v35, %v331_v36 }
  0xfa   : > { %vm341_vm9 = vcmp.lt.s32.totalorder %v339_v38, %v340_v39 }
  0xfb   : > { %v342_v42 = vsel %vm341_vm9, %v339_v38, %v340_v39 }
  0xfc   : > { %v343_v43 = vcombine.low %v333_v41, %v342_v42 }
  0xfe   : > { %v350_v44 = vrot.slane %v343_v43, %v349_v40 }
 0x100   : > { %v357_v45 = vrot.slane %v350_v44, %v349_v40 }
 0x102   : > { %362 = vst.msk [vmem:[%s201_s18] sm:$0x3] %vm360_vm10, %v357_v45 }
 0x103   : > { %560 = shalt.err (!%p557_p5)
}
 0x104   : > { %s561_s4 = scalar_lea.hbm %s378_s26, 32  ;;  %s565_s7 = scalar_lea.hbm %s757_s3, 64 }
 0x105   : > { %p562_p6 = scmp.ne.s32.totalorder %s378_s26, %s561_s4  ;;  %p566_p10 = scmp.lt.s32.totalorder %s378_s26, %s757_s3 }
 0x106   : > { %p567_p11 = scmp.lt.s32.totalorder %s565_s7, %s561_s4 }
 0x107   : > { %p563_p7 = pnand %p562_p6, %p689_p4 }
 0x108   : > { %p568_p12 = por %p567_p11, %p566_p10 }
 0x109   : > { %p564_p9 = pneg %p563_p7 }
 0x10b   : > { %p569_p13 = pnand %p568_p12, %p564_p9 }
 0x10d   : > { %572 = shalt.err (!%p569_p13)
}
 0x10e   : > { %487 = dma.vmem_to_hbm [thread:$0]  (%p689_p4), %s381_s19, 32, %s378_s26, %s364_s27  }
 0x10f PF: > { %p493_p0 = scmp.ge.s32.totalorder %s623_s17, 2  ;;  %s392_s10 = sand.u32 1, %s603_s12  }
 0x110   : > { %s393_s11 = scalar_lea.sflag [#allocation3], %s392_s10 }
 0x111   : > { %p490_p1 = pnand %p493_p0, %p696_p8 }
 0x113   : > { %p491_p2 = pneg %p490_p1 }
 0x115   : > { %598 = dma.done.wait (%p491_p2), %s393_s11, 32  }
 0x116   : > { %600 = vsyncadd (%p491_p2), %s393_s11, 4294967264  ;;  %s16_s17 = sadd.s32 1, %s623_s17   ;;  %s760_s12 = smov %s607_s13 }
 0x117   : > { %p13_p3 = scmp.ge.s32.totalorder %s16_s17, 4   ;;  %s761_s13 = smov %s611_s14 }
 0x118   : > { %s762_s14 = smov %s702_s25  ;;  %s763_s15 = smov %s619_s16 }
 0x119   : > { %s764_s16 = smov %s766_s20  ;;  %15 = sbr.rel (!%p13_p3) target bundleno = 4 (0x4), region = 70 }
 0x11e   :  { %398 = vsyncpa [#allocation3], 1 }
 0x11f   :  { %400 = vsyncpa [#allocation3 + $0x1], 1 }

</bundles_post_ra>
